<compile_context>
chip_gen: v6e
topology: v6e:2x2x1
jax: 0.10.0
libtpu: 0.0.40
codegen_flags: <defaults>
</compile_context>

<pallas_src>
import functools

import jax
import jax.numpy as jnp
from jax.experimental import pallas as pl
from jax.experimental.pallas import tpu as pltpu

BLOCK_SIZE = 256      # max sequence length (causal mask buffer in the torch code)
DROPOUT_P = 0.2


def _round_up(n, m):
    return ((n + m - 1) // m) * m


def head_kernel(x_ref, wq_ref, wk_ref, wv_ref, *rest,
                scale, keep_thresh, inv_keep, apply_dropout):
    """One batch element: q/k/v projections, causal softmax attention, dropout."""
    if apply_dropout:
        bits_ref, o_ref = rest
    else:
        (o_ref,) = rest

    cdt = x_ref.dtype                      # compute dtype of the MXU operands
    x = x_ref[0]                           # (T, Cp)

    # Projections (MXU, f32 accumulation).
    q = jnp.dot(x, wq_ref[...], preferred_element_type=jnp.float32)   # (T, Hp)
    k = jnp.dot(x, wk_ref[...], preferred_element_type=jnp.float32)   # (T, Hp)
    v = jnp.dot(x, wv_ref[...], preferred_element_type=jnp.float32)   # (T, Hp)

    # Scores: q @ k^T * C**-0.5 (contract the head dim directly, no transpose op).
    s = jax.lax.dot_general(
        q.astype(cdt), k.astype(cdt),
        (((1,), (1,)), ((), ())),
        preferred_element_type=jnp.float32) * scale                   # (T, T)

    T = s.shape[0]
    row = jax.lax.broadcasted_iota(jnp.int32, (T, T), 0)
    col = jax.lax.broadcasted_iota(jnp.int32, (T, T), 1)
    s = jnp.where(row >= col, s, jnp.float32(-1e30))                  # causal mask

    # Numerically stable softmax in f32.
    s = s - jnp.max(s, axis=-1, keepdims=True)
    e = jnp.exp(s)
    wei = e / jnp.sum(e, axis=-1, keepdims=True)

    if apply_dropout:
        # Inverted dropout: keep with prob 1-p, scale by 1/(1-p).
        # Integer threshold compare on the precomputed uniform uint32 bits.
        # TODO(synk): bitstream differs from torch's RNG; Bernoulli(1-p)
        #             semantics and scaling match nn.Dropout(p) in train mode.
        keep = bits_ref[0] >= jnp.uint32(keep_thresh)
        wei = jnp.where(keep, wei * inv_keep, 0.0)

    out = jnp.dot(wei.astype(cdt), v.astype(cdt),
                  preferred_element_type=jnp.float32)                 # (T, Hp)
    o_ref[0] = out.astype(o_ref.dtype)


def head_forward(x, params, *, seed=0, training=True,
                 compute_dtype=jnp.bfloat16):
    """x: (B, T, C) float32.  params = (wq, wk, wv), each (C, head_size)."""
    wq, wk, wv = params
    B, T, C = x.shape
    hs = wq.shape[1]
    assert T <= BLOCK_SIZE
    scale = float(C) ** -0.5               # torch code scales by C**-0.5 (n_embd)

    # Zero-pad feature dims to lane-dense multiples of 128 (math unchanged).
    Cp = _round_up(C, 128)
    Hp = _round_up(hs, 128)
    if Cp != C:
        x = jnp.pad(x, ((0, 0), (0, 0), (0, Cp - C)))
        wq, wk, wv = (jnp.pad(w, ((0, Cp - C), (0, 0))) for w in (wq, wk, wv))
    if Hp != hs:
        wq, wk, wv = (jnp.pad(w, ((0, 0), (0, Hp - hs))) for w in (wq, wk, wv))

    out_dtype = x.dtype
    if jnp.dtype(compute_dtype) != x.dtype:
        # bf16 operands -> full MXU rate, half the weight/activation DMA traffic.
        x = x.astype(compute_dtype)
        wq, wk, wv = (w.astype(compute_dtype) for w in (wq, wk, wv))

    apply_dropout = bool(training) and DROPOUT_P > 0.0

    inputs = [x, wq, wk, wv]
    in_specs = [
        pl.BlockSpec((1, T, Cp), lambda b: (b, 0, 0)),   # x rows of one batch
        pl.BlockSpec((Cp, Hp), lambda b: (0, 0)),        # Wq (resident)
        pl.BlockSpec((Cp, Hp), lambda b: (0, 0)),        # Wk (resident)
        pl.BlockSpec((Cp, Hp), lambda b: (0, 0)),        # Wv (resident)
    ]
    if apply_dropout:
        bits = jax.random.bits(jax.random.PRNGKey(seed), (B, T, T), jnp.uint32)
        inputs.append(bits)
        in_specs.append(pl.BlockSpec((1, T, T), lambda b: (b, 0, 0)))

    kernel = functools.partial(
        head_kernel,
        scale=scale,
        keep_thresh=int(round(DROPOUT_P * (2 ** 32))),
        inv_keep=1.0 / (1.0 - DROPOUT_P),
        apply_dropout=apply_dropout,
    )

    # VMEM footprint at realistic sizes (T=256, C=384, hs<=384) is ~2 MiB, far
    # under every chip's scoped limit, so no vmem_limit_bytes override needed.
    out = pl.pallas_call(
        kernel,
        out_shape=jax.ShapeDtypeStruct((B, T, Hp), out_dtype),
        grid=(B,),
        in_specs=in_specs,
        out_specs=pl.BlockSpec((1, T, Hp), lambda b: (b, 0, 0)),
        compiler_params=pltpu.CompilerParams(
            dimension_semantics=("parallel",)),
    )(*inputs)
    return out[:, :, :hs]


def init_params(key, n_embd, head_size):
    """Mimics nn.Linear(n_embd, head_size, bias=False) init: U(+-1/sqrt(fan_in))."""
    kq, kk, kv = jax.random.split(key, 3)
    bound = 1.0 / jnp.sqrt(n_embd)
    shape = (n_embd, head_size)            # (in, out) layout
    wq = jax.random.uniform(kq, shape, jnp.float32, -bound, bound)
    wk = jax.random.uniform(kk, shape, jnp.float32, -bound, bound)
    wv = jax.random.uniform(kv, shape, jnp.float32, -bound, bound)
    return wq, wk, wv


def head_ref(x, params):
    """Pure-JAX reference (eval mode: dropout = identity), high precision."""
    wq, wk, wv = params
    B, T, C = x.shape
    hp = jax.lax.Precision.HIGHEST
    q = jnp.einsum("btc,ch->bth", x, wq, precision=hp)
    k = jnp.einsum("btc,ch->bth", x, wk, precision=hp)
    v = jnp.einsum("btc,ch->bth", x, wv, precision=hp)
    wei = jnp.einsum("bth,bsh->bts", q, k, precision=hp) * (C ** -0.5)
    mask = jnp.tril(jnp.ones((T, T), dtype=bool))
    wei = jnp.where(mask[None], wei, -jnp.inf)
    wei = jax.nn.softmax(wei, axis=-1)
    return jnp.einsum("bts,bsh->bth", wei, v, precision=hp)


if __name__ == "__main__":
    key = jax.random.PRNGKey(0)
    kx, kp = jax.random.split(key)

    B, T, n_embd_small, head_size = 2, 8, 32, 16   # small shapes for (B, T, n_embd)
    x = jax.random.normal(kx, (B, T, n_embd_small), jnp.float32)
    params = init_params(kp, n_embd_small, head_size)

    # Eval mode (dropout off), f32 compute path: check against pure-JAX reference.
    y_eval = head_forward(x, params, training=False, compute_dtype=jnp.float32)
    y_eval = jax.block_until_ready(y_eval)
    y_ref = head_ref(x, params)
    assert y_eval.shape == (B, T, head_size)
    assert jnp.allclose(y_eval, y_ref, atol=2e-3, rtol=2e-3), "eval-mode mismatch"

    # Training mode: bf16 MXU operands (f32 accumulation) + inverted dropout p=0.2.
    y_train = head_forward(x, params, seed=1234, training=True)
    y_train = jax.block_until_ready(y_train)
    assert y_train.shape == (B, T, head_size)
    assert bool(jnp.all(jnp.isfinite(y_train)))

    print("KERNEL_OK")
</pallas_src>

<mosaic_0001>
module attributes {stable_mosaic.version = 11 : i64} {
  func.func @head_kernel(%arg0: i32, %arg1: memref<1x8x128xf32, #tpu.memory_space<vmem>>, %arg2: memref<128x128xf32, #tpu.memory_space<vmem>>, %arg3: memref<128x128xf32, #tpu.memory_space<vmem>>, %arg4: memref<128x128xf32, #tpu.memory_space<vmem>>, %arg5: memref<1x8x128xf32, #tpu.memory_space<vmem>>) attributes {dimension_semantics = [#tpu.dimension_semantics<parallel>], iteration_bounds = array<i64: 2>, scalar_prefetch = 0 : i64, scratch_operands = 0 : i64, tpu.core_type = #tpu.core_type<tc>, window_params = [{transform_indices = @transform_0, window_bounds = array<i64: 1, 8, 128>}, {pipeline_mode = #tpu.pipeline_mode<synchronous>, transform_indices = @transform_1, window_bounds = array<i64: 128, 128>}, {pipeline_mode = #tpu.pipeline_mode<synchronous>, transform_indices = @transform_2, window_bounds = array<i64: 128, 128>}, {pipeline_mode = #tpu.pipeline_mode<synchronous>, transform_indices = @transform_3, window_bounds = array<i64: 128, 128>}, {transform_indices = @transform_4, window_bounds = array<i64: 1, 8, 128>}]} {
    %c0 = arith.constant 0 : index
    %c0_0 = arith.constant 0 : index
    %c0_1 = arith.constant 0 : index
    %0 = vector.load %arg1[%c0, %c0_0, %c0_1] : memref<1x8x128xf32, #tpu.memory_space<vmem>>, vector<1x8x128xf32>
    %1 = vector.shape_cast %0 : vector<1x8x128xf32> to vector<8x128xf32>
    %c0_2 = arith.constant 0 : index
    %c0_3 = arith.constant 0 : index
    %2 = vector.load %arg2[%c0_2, %c0_3] : memref<128x128xf32, #tpu.memory_space<vmem>>, vector<128x128xf32>
    %cst = arith.constant dense<0.000000e+00> : vector<8x128xf32>
    %3 = tpu.matmul %1, %2, %cst {dimension_numbers = #tpu.dot_dimension_numbers<[1], [0], [0], [1], [0, 0, 1, 1], [], []>} : vector<8x128xf32>, vector<128x128xf32>, vector<8x128xf32> -> vector<8x128xf32>
    %c0_4 = arith.constant 0 : index
    %c0_5 = arith.constant 0 : index
    %4 = vector.load %arg3[%c0_4, %c0_5] : memref<128x128xf32, #tpu.memory_space<vmem>>, vector<128x128xf32>
    %cst_6 = arith.constant dense<0.000000e+00> : vector<8x128xf32>
    %5 = tpu.matmul %1, %4, %cst_6 {dimension_numbers = #tpu.dot_dimension_numbers<[1], [0], [0], [1], [0, 0, 1, 1], [], []>} : vector<8x128xf32>, vector<128x128xf32>, vector<8x128xf32> -> vector<8x128xf32>
    %c0_7 = arith.constant 0 : index
    %c0_8 = arith.constant 0 : index
    %6 = vector.load %arg4[%c0_7, %c0_8] : memref<128x128xf32, #tpu.memory_space<vmem>>, vector<128x128xf32>
    %cst_9 = arith.constant dense<0.000000e+00> : vector<8x128xf32>
    %7 = tpu.matmul %1, %6, %cst_9 {dimension_numbers = #tpu.dot_dimension_numbers<[1], [0], [0], [1], [0, 0, 1, 1], [], []>} : vector<8x128xf32>, vector<128x128xf32>, vector<8x128xf32> -> vector<8x128xf32>
    %cst_10 = arith.constant dense<0.000000e+00> : vector<8x8xf32>
    %8 = tpu.matmul %3, %5, %cst_10 {dimension_numbers = #tpu.dot_dimension_numbers<[1], [1], [0], [0], [0, 0, 1, 0], [], []>} : vector<8x128xf32>, vector<8x128xf32>, vector<8x8xf32> -> vector<8x8xf32>
    %cst_11 = arith.constant 0.176776692 : f32
    %9 = vector.broadcast %cst_11 : f32 to vector<8x8xf32>
    %10 = arith.mulf %8, %9 : vector<8x8xf32>
    %11 = tpu.iota {dimensions = array<i32: 0>} : vector<8x8xi32>
    %12 = tpu.iota {dimensions = array<i32: 1>} : vector<8x8xi32>
    %13 = arith.cmpi sge, %11, %12 : vector<8x8xi32>
    %cst_12 = arith.constant -1.000000e+30 : f32
    %14 = vector.broadcast %cst_12 : f32 to vector<8x8xf32>
    %15 = arith.select %13, %10, %14 : vector<8x8xi1>, vector<8x8xf32>
    %cst_13 = arith.constant dense<0xFF800000> : vector<8xf32>
    %16 = vector.multi_reduction <maximumf>, %15, %cst_13 [1] : vector<8x8xf32> to vector<8xf32>
    %17 = vector.shape_cast %16 : vector<8xf32> to vector<8x1xf32>
    %18 = vector.broadcast %17 : vector<8x1xf32> to vector<8x8xf32>
    %19 = arith.subf %15, %18 : vector<8x8xf32>
    %20 = math.exp %19 : vector<8x8xf32>
    %cst_14 = arith.constant dense<0.000000e+00> : vector<8xf32>
    %21 = vector.multi_reduction <add>, %20, %cst_14 [1] : vector<8x8xf32> to vector<8xf32>
    %22 = vector.shape_cast %21 : vector<8xf32> to vector<8x1xf32>
    %23 = vector.broadcast %22 : vector<8x1xf32> to vector<8x8xf32>
    %24 = arith.divf %20, %23 : vector<8x8xf32>
    %cst_15 = arith.constant dense<0.000000e+00> : vector<8x128xf32>
    %25 = tpu.matmul %24, %7, %cst_15 {dimension_numbers = #tpu.dot_dimension_numbers<[1], [0], [0], [1], [0, 0, 1, 1], [], []>} : vector<8x8xf32>, vector<8x128xf32>, vector<8x128xf32> -> vector<8x128xf32>
    %c0_16 = arith.constant 0 : index
    %c0_17 = arith.constant 0 : index
    %c0_18 = arith.constant 0 : index
    %26 = vector.load %arg5[%c0_16, %c0_17, %c0_18] : memref<1x8x128xf32, #tpu.memory_space<vmem>>, vector<1x8x128xf32>
    %27 = vector.shape_cast %26 : vector<1x8x128xf32> to vector<8x128xf32>
    %28 = vector.shape_cast %25 : vector<8x128xf32> to vector<1x8x128xf32>
    tpu.vector_store %arg5[%c0_16, %c0_17, %c0_18], %28 {strides = array<i32>} : memref<1x8x128xf32, #tpu.memory_space<vmem>>, vector<1x8x128xf32>,
    return
  }
  func.func @transform_0(%arg0: i32) -> (i32, i32, i32) {
    %c0_i32 = arith.constant 0 : i32
    %c0_i32_0 = arith.constant 0 : i32
    %c0_i32_1 = arith.constant 0 : i32
    return %arg0, %c0_i32, %c0_i32_0 : i32, i32, i32
  }
  func.func @transform_1(%arg0: i32) -> (i32, i32) {
    %c0_i32 = arith.constant 0 : i32
    %c0_i32_0 = arith.constant 0 : i32
    %c0_i32_1 = arith.constant 0 : i32
    return %c0_i32, %c0_i32_0 : i32, i32
  }
  func.func @transform_2(%arg0: i32) -> (i32, i32) {
    %c0_i32 = arith.constant 0 : i32
    %c0_i32_0 = arith.constant 0 : i32
    %c0_i32_1 = arith.constant 0 : i32
    return %c0_i32, %c0_i32_0 : i32, i32
  }
  func.func @transform_3(%arg0: i32) -> (i32, i32) {
    %c0_i32 = arith.constant 0 : i32
    %c0_i32_0 = arith.constant 0 : i32
    %c0_i32_1 = arith.constant 0 : i32
    return %c0_i32, %c0_i32_0 : i32, i32
  }
  func.func @transform_4(%arg0: i32) -> (i32, i32, i32) {
    %c0_i32 = arith.constant 0 : i32
    %c0_i32_0 = arith.constant 0 : i32
    %c0_i32_1 = arith.constant 0 : i32
    return %arg0, %c0_i32, %c0_i32_0 : i32, i32, i32
  }
}

</mosaic_0001>

<bundles_post_ra>
// kernel: tpu_custom_call.1
= control target key start
LH: loop header
LB: loop body
LE: loop exit
PB: predicated region body
PF: predicated region fallthrough
CT: control target
= control target key end

     0   :  { %9 = vsyncpa [#allocation3], 0  ;;  %s1544_s0 = inlined_call_operand.hbm [shape: f32[2,8,128], index: 0, kind: input, shape index: {}]   ;;  %s1545_s1 = inlined_call_operand.hbm [shape: f32[128,128], index: 1, kind: input, shape index: {}]   ;;  %s1546_s2 = inlined_call_operand.hbm [shape: f32[128,128], index: 2, kind: input, shape index: {}]   ;;  %s1547_s3 = inlined_call_operand.hbm [shape: f32[128,128], index: 3, kind: input, shape index: {}]   ;;  %s1548_s4 = inlined_call_operand.hbm [shape: f32[2,8,128], index: 4, kind: output, shape index: {}]  }
   0x1   :  { %11 = vsyncpa [#allocation3 + $0x1], 0 }
   0x2   :  { %12 = vsyncpa [#allocation6], 0 }
   0x3   :  { %13 = vsyncpa [#allocation9], 0 }
   0x4   :  { %14 = vsyncpa [#allocation4], 0 }
   0x5   :  { %16 = vsyncpa [#allocation4 + $0x1], 0  ;;  %s1280_s15 = smov 0   ;;  %s1282_s16 = smov 0  }
   0x6   :  { %s1284_s17 = smov 0   ;;  %s1286_s18 = smov 0  }
   0x7 LB: > { %s1301_s19 = sadd.s32 4294967295, %s1244_s18   ;;  %s792_s20 = sadd.s32 4294967294, %s1244_s18   ;;  %s1244_s18 = sphi %s1286_s18, %s1572_s18   ;;  %s1240_s17 = sphi %s1284_s17, %s1571_s17   ;;  %s1236_s16 = sphi %s1282_s16, %s1570_s16   ;;  %s1232_s15 = sphi %s1280_s15, %s1569_s15  }
   0x8   : > { %p42_p0 = scmp.ne.s32.totalorder %s1236_s16, %s1232_s15  ;;  %p1549_p1 = scmp.eq.s32.totalorder %s1301_s19, 0 }
   0x9   : > { %p135_p3 = scmp.eq.s32.totalorder %s792_s20, 1  ;;  %p793_p5 = scmp.ge.s32.totalorder %s1244_s18, 1 }
   0xa   : > { %p1310_p4 = por %p1549_p1, %p42_p0  ;;  %p142_p7 = scmp.lt.s32.totalorder %s1244_s18, 3 }
   0xb   : > { %p1315_p6 = por %p135_p3, %p42_p0  ;;  %s1246_s24 = smov [#allocation5]  }
   0xc   : > { %s1553_s21 = scalar_select %p1310_p4, 1, 0 }
   0xd   : > { %s1554_s22 = scalar_select %p1315_p6, 1, 0 }
   0xe   : > { %p1320_p8 = pnand %p793_p5, %p142_p7  ;;  %s154_s25 = sshll.u32 %s1246_s24, 4  ;;  %s155_s25 = int_to_ptr.vmem [resolvable:$true] %s154_s25 }
   0xf   : > { %s1247_s27 = smov [#allocation7]   ;;  %s1248_s29 = smov [#allocation8]  }
  0x10   : > { %s1555_s23 = scalar_select %p1320_p8, 1, 0 }
  0x11   : > { %p997_p9 = pneg %p1320_p8  ;;  %s167_s28 = sshll.u32 %s1247_s27, 4  ;;  %s168_s28 = int_to_ptr.vmem [resolvable:$true] %s167_s28 }
  0x12   : > { %s180_s30 = sshll.u32 %s1248_s29, 4  ;;  %s1077_s5 = scalar_lea.vmem %s155_s25, 2048  ;;  %s181_s30 = int_to_ptr.vmem [resolvable:$true] %s180_s30 }
  0x13   : > { %p1329_p11 = pnand %p997_p9, %p1549_p1  ;;  %p1078_p13 = scmp.ne.s32.totalorder %s155_s25, %s1077_s5 }
  0x14   : > { %p1085_p5 = scmp.lt.s32.totalorder %s155_s25, %s155_s25  ;;  %p1086_p7 = scmp.lt.s32.totalorder %s1077_s5, %s1077_s5 }
  0x15   : > { %p1068_p12 = pneg %p1329_p11 }
  0x16   : > { %p1087_p9 = por %p1086_p7, %p1085_p5 }
  0x17   : > { %p1080_p0 = pnand %p1078_p13, %p1068_p12 }
  0x19   : > { %p1081_p3 = pneg %p1080_p0 }
  0x1b   : > { %p1088_p10 = pnand %p1087_p9, %p1081_p3 }
  0x1d   : > { %1091 = shalt.err (!%p1088_p10)
}
  0x1e   : > { %s1249_s6 = smov 128   ;;  %s1250_s7 = smov 8  }
  0x1f   : > { %1000 = dma.hbm_to_vmem [thread:$0]  (!%p1329_p11), %s1545_s1, 2048, %s155_s25, [#allocation6], %s1249_s6, %s1249_s6, %s1250_s7  }
  0x20   : > { %s1103_s10 = scalar_lea.vmem %s168_s28, 2048  ;;  %p1111_p2 = scmp.lt.s32.totalorder %s168_s28, %s168_s28 }
  0x21   : > { %p1104_p1 = scmp.ne.s32.totalorder %s168_s28, %s1103_s10  ;;  %p1112_p6 = scmp.lt.s32.totalorder %s1103_s10, %s1103_s10 }
  0x23   : > { %p1106_p13 = pnand %p1104_p1, %p1068_p12  ;;  %p1113_p5 = por %p1112_p6, %p1111_p2 }
  0x25   : > { %p1107_p0 = pneg %p1106_p13 }
  0x27   : > { %p1114_p3 = pnand %p1113_p5, %p1107_p0 }
  0x29   : > { %1117 = shalt.err (!%p1114_p3)
}
  0x2a   : > { %1003 = dma.hbm_to_vmem [thread:$0]  (!%p1329_p11), %s1546_s2, 2048, %s168_s28, [#allocation6], %s1249_s6, %s1249_s6, %s1250_s7  }
  0x2b   : > { %s1129_s13 = scalar_lea.vmem %s181_s30, 2048  ;;  %p1137_p9 = scmp.lt.s32.totalorder %s181_s30, %s181_s30 }
  0x2c   : > { %p1130_p10 = scmp.ne.s32.totalorder %s181_s30, %s1129_s13  ;;  %p1138_p13 = scmp.lt.s32.totalorder %s1129_s13, %s1129_s13 }
  0x2e   : > { %p1132_p7 = pnand %p1130_p10, %p1068_p12  ;;  %p1139_p4 = por %p1138_p13, %p1137_p9 }
  0x30   : > { %p1133_p1 = pneg %p1132_p7 }
  0x32   : > { %p1140_p2 = pnand %p1139_p4, %p1133_p1 }
  0x34   : > { %1143 = shalt.err (!%p1140_p2)
}
  0x35   : > { %1006 = dma.hbm_to_vmem [thread:$0]  (!%p1329_p11), %s1547_s3, 2048, %s181_s30, [#allocation9], %s1249_s6, %s1249_s6, %s1250_s7  }
  0x36   : > { %s1360_s24 = sadd.s32 1, %s1244_s18   ;;  %s29_s26 = sadd.s32 1, %s1240_s17 }
  0x37   : > { %s26_s25 = ssub.s32 %s1244_s18, %s1360_s24  ;;  %p36_p6 = scmp.ne.s32.totalorder %s1240_s17, %s1236_s16 }
  0x38   : > { %p27_p4 = scmp.eq.s32.totalorder %s26_s25, 0  ;;  %p37_p12 = scmp.eq.s32.totalorder %s1244_s18, 0 }
  0x39   : > { %p1018_p0 = scmp.lt.s32.totalorder %s1244_s18, 2  ;;  %p1557_p3 = scmp.eq.s32.totalorder %s1301_s19, 1 }
  0x3a   : > { %s1370_s27 = scalar_select %p27_p4, %s1240_s17, %s29_s26  }
  0x3b   : > { %p38_p5 = por %p37_p12, %p36_p6  ;;  %p1374_p10 = por %p1557_p3, %p36_p6 }
  0x3c   : > { %s194_s29 = sand.u32 1, %s1240_s17   ;;  %s799_s5 = sshll.u32 %s1244_s18, 7 }
  0x3d   : > { %s1558_s28 = scalar_select %p1374_p10, 1, 0 }
  0x3e   : > { %s798_s30 = sshll.u32 %s194_s29, 3  ;;  %s1383_s8 = scalar_lea.hbm %s1544_s0, %s799_s5 }
  0x3f   : > { %s198_s9 = scalar_lea.vmem [#allocation2], %s798_s30  ;;  %p1385_p11 = pnand %p1018_p0, %p38_p5 }
  0x40   : > { %s205_s10 = sshll.u32 %s198_s9, 4  ;;  %s195_s12 = scalar_lea.sflag [#allocation3], %s194_s29  ;;  %s206_s10 = int_to_ptr.vmem [resolvable:$true] %s205_s10 }
  0x41   : > { %s1144_s13 = scalar_lea.hbm %s1383_s8, 128  ;;  %p1146_p1 = pneg %p1385_p11 }
  0x42   : > { %p1145_p7 = scmp.ne.s32.totalorder %s1383_s8, %s1144_s13  ;;  %s1149_s25 = scalar_lea.hbm %s1544_s0, 256 }
  0x43   : > { %p1150_p2 = scmp.lt.s32.totalorder %s1383_s8, %s1544_s0  ;;  %p1151_p4 = scmp.lt.s32.totalorder %s1149_s25, %s1144_s13 }
  0x44   : > { %p1147_p9 = pnand %p1146_p1, %p1145_p7 }
  0x45   : > { %p1152_p6 = por %p1151_p4, %p1150_p2 }
  0x46   : > { %p1148_p13 = pneg %p1147_p9 }
  0x48   : > { %p1153_p12 = pnand %p1152_p6, %p1148_p13 }
  0x4a   : > { %1156 = shalt.err (!%p1153_p12)
}
  0x4b   : > { %s1157_s30 = scalar_lea.vmem %s206_s10, 128  ;;  %s1251_s29 = smov [#allocation2]  }
  0x4c   : > { %p1158_p0 = scmp.ne.s32.totalorder %s206_s10, %s1157_s30  ;;  %s1162_s6 = sshll.u32 %s1251_s29, 4  ;;  %s1163_s6 = int_to_ptr.vmem [resolvable:$false] %s1162_s6 }
  0x4d   : > { %s1164_s7 = scalar_lea.vmem %s1163_s6, 256  ;;  %p1165_p7 = scmp.lt.s32.totalorder %s206_s10, %s1163_s6 }
  0x4e   : > { %p1160_p5 = pnand %p1158_p0, %p1146_p1  ;;  %p1166_p9 = scmp.lt.s32.totalorder %s1164_s7, %s1157_s30 }
  0x50   : > { %p1161_p3 = pneg %p1160_p5  ;;  %p1167_p10 = por %p1166_p9, %p1165_p7 }
  0x52   : > { %p1168_p8 = pnand %p1167_p10, %p1161_p3 }
  0x54   : > { %1171 = shalt.err (!%p1168_p8)
}
  0x55   : > { %1010 = dma.hbm_to_vmem [thread:$0]  (!%p1385_p11), %s1383_s8, 128, %s206_s10, %s195_s12  }
  0x56   : > { %p1560_p13 = scmp.ne.s32.totalorder %s1555_s23, 0 }
  0x57   : > { %s1406_s9 = sand.u32 (!%p1560_p13), 1, %s1236_s16   ;;  %p1561_p8 = scmp.ne.s32.totalorder (!%p1560_p13), %s1553_s21, 0 }
  0x58   : > { %214 = sbr.rel (%p1560_p13) target bundleno = 1045 (0x415), region = 36  ;;  %s801_s13 = sshll.u32 (!%p1560_p13), %s1406_s9, 3 }
  0x59   : > { %s217_s14 = scalar_lea.sflag (!%p1560_p13), [#allocation3], %s1406_s9  ;;  %s1412_s20 = scalar_lea.vmem (!%p1560_p13), [#allocation2], %s801_s13 }
  0x5d   : > { %1215 = dma.done.wait (%p1561_p8), %s217_s14, 128  }
  0x5e   : > { %1217 = vsyncadd (%p1561_p8), %s217_s14, 4294967168  ;;  %p1562_p10 = scmp.eq.s32.totalorder %s1301_s19, 0 }
  0x60   : > { %1219 = dma.done.wait (%p1562_p10), [#allocation6], 4096   ;;  %p1563_p11 = pmov %p1562_p10 }
  0x61   : > { %p1564_p1 = pmov %p1562_p10 }
  0x62   : > { %1221 = vsyncadd (%p1563_p11), [#allocation6], 4294963200 }
  0x63   : > { %1223 = dma.done.wait (%p1564_p1), [#allocation9], 2048   ;;  %p1565_p2 = pmov %p1564_p1 }
  0x64   : > { %v1252_v0 = vmov 0.0   ;;  %vm1253_vm0 = vmmov 0   ;;  %v359_v1 = vld [vmem:[#allocation7 + $0x78] sm:$0xff]  ;;  %v358_v3 = vld [vmem:[#allocation7 + $0x70] sm:$0xff]  ;;  %v357_v5 = vld [vmem:[#allocation7 + $0x68] sm:$0xff]  ;;  %v587_v54 = vlaneseq  ;;  %vm593_vm2 = vcmask 64512  }
  0x65   : > { %1225 = vsyncadd (%p1565_p2), [#allocation9], 4294965248  ;;  %901 = vmatprep.subr.mxu1 %v1252_v0  ;;  %866 = vmatprep.subr.mxu0 %v1252_v0  ;;  %v273_v2 = vld [vmem:[#allocation5 + $0x78] sm:$0xff]  ;;  %v272_v4 = vld [vmem:[#allocation5 + $0x70] sm:$0xff]  ;;  %s256_s21 = scalar_lea.vmem [#allocation10], %s801_s13  ;;  %s808_s8 = sshll.u32 %s1301_s19, 7 }
  0x66   : > { %933 = vmatprep.mubr.msk.f32.mxu1 %vm1253_vm0, %v1252_v0  ;;  %898 = vmatprep.mubr.msk.f32.mxu0 %vm1253_vm0, %v1252_v0  ;;  %v271_v6 = vld [vmem:[#allocation5 + $0x68] sm:$0xff]  ;;  %v356_v7 = vld [vmem:[#allocation7 + $0x60] sm:$0xff]  ;;  %v355_v9 = vld [vmem:[#allocation7 + $0x58] sm:$0xff]  ;;  %v588_v55 = vshrl.u32 %v587_v54, 7  ;;  %v590_v56 = vand.u32 127, %v587_v54  ;;  %s693_s23 = sshll.u32 %s256_s21, 4  ;;  %s1503_s12 = scalar_lea.hbm %s1548_s4, %s808_s8  ;;  %s1498_s23 = int_to_ptr.vmem [resolvable:$true] %s693_s23 }
  0x67   : > { %902 = vmatpush3.msra.mxu1 %v359_v1  ;;  %867 = vmatpush3.msra.mxu0 %v273_v2  ;;  %v270_v8 = vld [vmem:[#allocation5 + $0x60] sm:$0xff]  ;;  %v269_v10 = vld [vmem:[#allocation5 + $0x58] sm:$0xff]  ;;  %v354_v11 = vld [vmem:[#allocation7 + $0x50] sm:$0xff]  ;;  %s680_s25 = scalar_lea.sflag [#allocation4], %s1406_s9  ;;  %s1172_s26 = scalar_lea.vmem %s1498_s23, 128 }
  0x68   : > { %903 = vmatprep.subr.mxu1 %v1252_v0  ;;  %868 = vmatprep.subr.mxu0 %v1252_v0  ;;  %v268_v12 = vld [vmem:[#allocation5 + $0x50] sm:$0xff]  ;;  %v353_v13 = vld [vmem:[#allocation7 + $0x48] sm:$0xff]  ;;  %v352_v15 = vld [vmem:[#allocation7 + $0x40] sm:$0xff]  ;;  %vm591_vm1 = vcmp.ge.s32.totalorder %v588_v55, %v590_v56  ;;  %p1173_p4 = scmp.ne.s32.totalorder %s1498_s23, %s1172_s26  ;;  %p1566_p6 = scmp.ne.s32.totalorder %s1558_s28, 0 }
  0x69   : > { %904 = vmatpush3.msra.mxu1 %v358_v3  ;;  %869 = vmatpush3.msra.mxu0 %v272_v4  ;;  %v267_v14 = vld [vmem:[#allocation5 + $0x48] sm:$0xff]  ;;  %v266_v16 = vld [vmem:[#allocation5 + $0x40] sm:$0xff]  ;;  %v351_v17 = vld [vmem:[#allocation7 + $0x38] sm:$0xff]  ;;  %s1254_s19 = smov [#allocation10]  }
  0x6a   : > { %905 = vmatprep.subr.mxu1 %v1252_v0  ;;  %870 = vmatprep.subr.mxu0 %v1252_v0  ;;  %v265_v18 = vld [vmem:[#allocation5 + $0x38] sm:$0xff]  ;;  %v350_v19 = vld [vmem:[#allocation7 + $0x30] sm:$0xff]  ;;  %v349_v21 = vld [vmem:[#allocation7 + $0x28] sm:$0xff]  ;;  %p1174_p12 = pnand %p1173_p4, %p1566_p6  ;;  %s1176_s5 = sshll.u32 %s1254_s19, 4  ;;  %s1177_s5 = int_to_ptr.vmem [resolvable:$false] %s1176_s5 }
  0x6b   : > { %906 = vmatpush3.msra.mxu1 %v357_v5  ;;  %871 = vmatpush3.msra.mxu0 %v271_v6  ;;  %v264_v20 = vld [vmem:[#allocation5 + $0x30] sm:$0xff]  ;;  %v263_v22 = vld [vmem:[#allocation5 + $0x28] sm:$0xff]  ;;  %v348_v23 = vld [vmem:[#allocation7 + $0x20] sm:$0xff]  ;;  %s1178_s30 = scalar_lea.vmem %s1177_s5, 256  ;;  %p1179_p5 = scmp.lt.s32.totalorder %s1498_s23, %s1177_s5 }
  0x6c   : > { %907 = vmatprep.subr.mxu1 %v1252_v0  ;;  %872 = vmatprep.subr.mxu0 %v1252_v0  ;;  %v262_v24 = vld [vmem:[#allocation5 + $0x20] sm:$0xff]  ;;  %v347_v25 = vld [vmem:[#allocation7 + $0x18] sm:$0xff]  ;;  %v346_v27 = vld [vmem:[#allocation7 + $0x10] sm:$0xff]  ;;  %p1175_p0 = pneg %p1174_p12  ;;  %p1180_p3 = scmp.lt.s32.totalorder %s1178_s30, %s1172_s26 }
  0x6d   : > { %908 = vmatpush3.msra.mxu1 %v356_v7  ;;  %873 = vmatpush3.msra.mxu0 %v270_v8  ;;  %v261_v26 = vld [vmem:[#allocation5 + $0x18] sm:$0xff]  ;;  %v260_v28 = vld [vmem:[#allocation5 + $0x10] sm:$0xff]  ;;  %v345_v29 = vld [vmem:[#allocation7 + $0x8] sm:$0xff] }
  0x6e   : > { %909 = vmatprep.subr.mxu1 %v1252_v0  ;;  %874 = vmatprep.subr.mxu0 %v1252_v0  ;;  %v259_v30 = vld [vmem:[#allocation5 + $0x8] sm:$0xff]  ;;  %v344_v31 = vld [vmem:[#allocation7] sm:$0xff]  ;;  %v1461_v33 = vld [vmem:[%s1412_s20] sm:$0xff]  ;;  %p1181_p7 = por %p1180_p3, %p1179_p5 }
  0x6f   : > { %910 = vmatpush3.msra.mxu1 %v355_v9  ;;  %875 = vmatpush3.msra.mxu0 %v269_v10  ;;  %v258_v32 = vld [vmem:[#allocation5] sm:$0xff]  ;;  %v445_v38 = vld [vmem:[#allocation8 + $0x78] sm:$0xff]  ;;  %v444_v39 = vld [vmem:[#allocation8 + $0x70] sm:$0xff] }
  0x70   : > { %911 = vmatprep.subr.mxu1 %v1252_v0  ;;  %876 = vmatprep.subr.mxu0 %v1252_v0  ;;  %v443_v40 = vld [vmem:[#allocation8 + $0x68] sm:$0xff]  ;;  %v442_v41 = vld [vmem:[#allocation8 + $0x60] sm:$0xff]  ;;  %v441_v42 = vld [vmem:[#allocation8 + $0x58] sm:$0xff]  ;;  %p1182_p9 = pnand %p1181_p7, %p1175_p0 }
  0x71   : > { %912 = vmatpush3.msra.mxu1 %v354_v11  ;;  %877 = vmatpush3.msra.mxu0 %v268_v12  ;;  %v440_v43 = vld [vmem:[#allocation8 + $0x50] sm:$0xff]  ;;  %v439_v44 = vld [vmem:[#allocation8 + $0x48] sm:$0xff]  ;;  %v438_v45 = vld [vmem:[#allocation8 + $0x40] sm:$0xff] }
  0x72   : > { %913 = vmatprep.subr.mxu1 %v1252_v0  ;;  %878 = vmatprep.subr.mxu0 %v1252_v0  ;;  %v437_v46 = vld [vmem:[#allocation8 + $0x38] sm:$0xff]  ;;  %v436_v47 = vld [vmem:[#allocation8 + $0x30] sm:$0xff]  ;;  %v435_v48 = vld [vmem:[#allocation8 + $0x28] sm:$0xff] }
  0x73   : > { %914 = vmatpush3.msra.mxu1 %v353_v13  ;;  %879 = vmatpush3.msra.mxu0 %v267_v14  ;;  %v434_v49 = vld [vmem:[#allocation8 + $0x20] sm:$0xff]  ;;  %v433_v50 = vld [vmem:[#allocation8 + $0x18] sm:$0xff]  ;;  %v432_v51 = vld [vmem:[#allocation8 + $0x10] sm:$0xff] }
  0x74   : > { %915 = vmatprep.subr.mxu1 %v1252_v0  ;;  %880 = vmatprep.subr.mxu0 %v1252_v0  ;;  %v431_v52 = vld [vmem:[#allocation8 + $0x8] sm:$0xff]  ;;  %v430_v53 = vld [vmem:[#allocation8] sm:$0xff] }
  0x75   : > { %916 = vmatpush3.msra.mxu1 %v352_v15  ;;  %881 = vmatpush3.msra.mxu0 %v266_v16 }
  0x76   : > { %917 = vmatprep.subr.mxu1 %v1252_v0  ;;  %882 = vmatprep.subr.mxu0 %v1252_v0 }
  0x77   : > { %918 = vmatpush3.msra.mxu1 %v351_v17  ;;  %883 = vmatpush3.msra.mxu0 %v265_v18 }
  0x78   : > { %919 = vmatprep.subr.mxu1 %v1252_v0  ;;  %884 = vmatprep.subr.mxu0 %v1252_v0 }
  0x79   : > { %920 = vmatpush3.msra.mxu1 %v350_v19  ;;  %885 = vmatpush3.msra.mxu0 %v264_v20 }
  0x7a   : > { %921 = vmatprep.subr.mxu1 %v1252_v0  ;;  %886 = vmatprep.subr.mxu0 %v1252_v0 }
  0x7b   : > { %922 = vmatpush3.msra.mxu1 %v349_v21  ;;  %887 = vmatpush3.msra.mxu0 %v263_v22 }
  0x7c   : > { %923 = vmatprep.subr.mxu1 %v1252_v0  ;;  %888 = vmatprep.subr.mxu0 %v1252_v0 }
  0x7d   : > { %924 = vmatpush3.msra.mxu1 %v348_v23  ;;  %889 = vmatpush3.msra.mxu0 %v262_v24 }
  0x7e   : > { %925 = vmatprep.subr.mxu1 %v1252_v0  ;;  %890 = vmatprep.subr.mxu0 %v1252_v0 }
  0x7f   : > { %926 = vmatpush3.msra.mxu1 %v347_v25  ;;  %891 = vmatpush3.msra.mxu0 %v261_v26 }
  0x80   : > { %927 = vmatprep.subr.mxu1 %v1252_v0  ;;  %892 = vmatprep.subr.mxu0 %v1252_v0 }
  0x81   : > { %928 = vmatpush3.msra.mxu1 %v346_v27  ;;  %893 = vmatpush3.msra.mxu0 %v260_v28 }
  0x82   : > { %929 = vmatprep.subr.mxu1 %v1252_v0  ;;  %894 = vmatprep.subr.mxu0 %v1252_v0 }
  0x83   : > { %930 = vmatpush3.msra.mxu1 %v345_v29  ;;  %895 = vmatpush3.msra.mxu0 %v259_v30 }
  0x84   : > { %931 = vmatprep.subr.mxu1 %v1252_v0  ;;  %896 = vmatprep.subr.mxu0 %v1252_v0 }
  0x85   : > { %932 = vmatpush3.msra.mxu1 %v344_v31  ;;  %897 = vmatpush3.msra.mxu0 %v258_v32 }
  0x86   : > { %934 = vmatmul.mubr.f32.vlgmr.msra.gmra.mxu1 %v1461_v33  ;;  %899 = vmatmul.mubr.f32.vlgmr.msra.gmra.mxu0 %v1461_v33 }
  0x87   : > { %971 = vmatprep.subr.mxu1 %v1252_v0  ;;  %973 = vmatprep.mubr.msk.f32.mxu1 %vm1253_vm0, %v1252_v0 }
  0x88   : > { %936 = vmatprep.subr.mxu0 %v1252_v0  ;;  %968 = vmatprep.mubr.msk.f32.mxu0 %vm1253_vm0, %v1252_v0 }
  0x89   : > { %937 = vmatpush3.msra.mxu0 %v445_v38 }
  0x8a   : > { %938 = vmatprep.subr.mxu0 %v1252_v0 }
  0x8b   : > { %939 = vmatpush3.msra.mxu0 %v444_v39 }
  0x8c   : > { %940 = vmatprep.subr.mxu0 %v1252_v0 }
  0x8d   : > { %941 = vmatpush3.msra.mxu0 %v443_v40 }
  0x8e   : > { %942 = vmatprep.subr.mxu0 %v1252_v0 }
  0x8f   : > { %943 = vmatpush3.msra.mxu0 %v442_v41 }
  0x90   : > { %944 = vmatprep.subr.mxu0 %v1252_v0 }
  0x91   : > { %945 = vmatpush3.msra.mxu0 %v441_v42 }
  0x92   : > { %946 = vmatprep.subr.mxu0 %v1252_v0 }
  0x93   : > { %947 = vmatpush3.msra.mxu0 %v440_v43 }
  0x94   : > { %948 = vmatprep.subr.mxu0 %v1252_v0 }
  0x95   : > { %949 = vmatpush3.msra.mxu0 %v439_v44 }
  0x96   : > { %950 = vmatprep.subr.mxu0 %v1252_v0 }
  0x97   : > { %951 = vmatpush3.msra.mxu0 %v438_v45 }
  0x98   : > { %952 = vmatprep.subr.mxu0 %v1252_v0 }
  0x99   : > { %953 = vmatpush3.msra.mxu0 %v437_v46 }
  0x9a   : > { %954 = vmatprep.subr.mxu0 %v1252_v0 }
  0x9b   : > { %955 = vmatpush3.msra.mxu0 %v436_v47 }
  0x9c   : > { %956 = vmatprep.subr.mxu0 %v1252_v0 }
  0x9d   : > { %957 = vmatpush3.msra.mxu0 %v435_v48 }
  0x9e   : > { %958 = vmatprep.subr.mxu0 %v1252_v0 }
  0x9f   : > { %959 = vmatpush3.msra.mxu0 %v434_v49 }
  0xa0   : > { %960 = vmatprep.subr.mxu0 %v1252_v0 }
  0xa1   : > { %961 = vmatpush3.msra.mxu0 %v433_v50 }
  0xa2   : > { %962 = vmatprep.subr.mxu0 %v1252_v0 }
  0xa3   : > { %963 = vmatpush3.msra.mxu0 %v432_v51 }
  0xa4   : > { %964 = vmatprep.subr.mxu0 %v1252_v0 }
  0xa5   : > { %965 = vmatpush3.msra.mxu0 %v431_v52 }
  0xa6   : > { %966 = vmatprep.subr.mxu0 %v1252_v0 }
  0xa7   : > { %967 = vmatpush3.msra.mxu0 %v430_v53 }
  0xa8   : > { %969 = vmatmul.mubr.f32.vlgmr.msra.gmra.mxu0 %v1461_v33 }
 0x146   : > { %v426_v34 = vpop.f32.mrf.mxu1  ;;  %v340_v35 = vpop.f32.mrf.mxu0 }
 0x147   : > { %972 = vmatpush3.xpose.msra.mxu1 %v426_v34 }
 0x148   : > { %v935_v36 = vpop.f32.mrf.mxu1  ;;  %v900_v37 = vpop.f32.mrf.mxu0  ;;  %976 = vmatprep.subr.mxu1 %v1252_v0 }
 0x14a   : > { %974 = vmatmul.mubr.f32.vlgmr.msra.gmra.mxu1 %v340_v35 }
 0x14b   : > { %978 = vmatprep.mubr.msk.f32.mxu1 %vm1253_vm0, %v1252_v0 }
 0x168   : > { %v512_v3 = vpop.f32.mrf.mxu0 }
 0x169   : > { %977 = vmatpush3.msra.mxu1 %v512_v3 }
 0x16a   : > { %v970_v4 = vpop.f32.mrf.mxu0 }
 0x20a   : > { %v582_v57 = vpop.f32.mrf.mxu1 }
 0x20b   : > { %v586_v58 = vmul.f32 0.17677669, %v582_v57 }
 0x20c   : > { %v975_v59 = vpop.f32.mrf.mxu1 }
 0x20d   : > { %v592_v60 = vsel %vm591_vm1, %v586_v58, -1e+30 }
 0x20e   : > { %v594_v61 = vsel %vm593_vm2, %v592_v60, -inf }
 0x20f   : > { %595 = vmax.xlane.f32.xlu0 %v594_v61 }
 0x298   : > { %v596_v62 = vpop.xlane.xlu0 %595 }
 0x299   : > { %v597_v63 = vsub.f32 %v592_v60, %v596_v62 }
 0x29b   : > { %v598_v0 = vmul.f32 1.442695, %v597_v63 }
 0x29d   : > { %1062 = vpow2.f32 %v598_v0 }
 0x2aa   : > { %v1063_v1 = vpop.eup %1062 }
 0x2ab   : > { %v600_v2 = vsel %vm593_vm2, %v1063_v1, 0.0 }
 0x2ac   : > { %601 = vadd.xlane.f32.xlu0 %v600_v2 }
 0x335   : > { %v602_v5 = vpop.xlane.xlu0 %601 }
 0x336   : > { %1064 = vrcp.f32 %v602_v5 }
 0x343   : > { %v1065_v6 = vpop.eup %1064 }
 0x344   : > { %v604_v7 = vmul.f32 %v1065_v6, %v1063_v1 }
 0x346   : > { %979 = vmatmul.mubr.msk.f32.vlgmr.msra.gmra.mxu1 %vm593_vm2, %v604_v7 }
 0x406   : > { %v674_v8 = vpop.f32.mrf.mxu1 }
 0x407   : > { %678 = vst [vmem:[%s256_s21] sm:$0xff] %v674_v8 }
 0x408   : > { %v980_v9 = vpop.f32.mrf.mxu1 }
 0x409   : > { %1185 = shalt.err (!%p1182_p9)
}
 0x40a   : > { %s1186_s29 = scalar_lea.hbm %s1503_s12, 128  ;;  %s1190_s9 = scalar_lea.hbm %s1548_s4, 256 }
 0x40b   : > { %p1187_p13 = scmp.ne.s32.totalorder %s1503_s12, %s1186_s29  ;;  %p1191_p11 = scmp.lt.s32.totalorder %s1503_s12, %s1548_s4 }
 0x40c   : > { %p1192_p1 = scmp.lt.s32.totalorder %s1190_s9, %s1186_s29 }
 0x40d   : > { %p1188_p8 = pnand %p1187_p13, %p1566_p6 }
 0x40e   : > { %p1193_p2 = por %p1192_p1, %p1191_p11 }
 0x40f   : > { %p1189_p10 = pneg %p1188_p8 }
 0x411   : > { %p1194_p4 = pnand %p1193_p2, %p1189_p10 }
 0x413   : > { %1197 = shalt.err (!%p1194_p4)
}
 0x414   : > { %995 = dma.vmem_to_hbm [thread:$0]  (%p1566_p6), %s1498_s23, 128, %s1503_s12, %s680_s25  }
 0x415 PF: > { %s705_s20 = sand.u32 1, %s1232_s15   ;;  %p1567_p12 = scmp.ne.s32.totalorder %s1554_s22, 0 }
 0x416   : > { %p1568_p0 = scmp.ge.s32.totalorder %s1244_s18, 2  ;;  %s706_s21 = scalar_lea.sflag [#allocation4], %s705_s20 }
 0x418   : > { %p1012_p5 = pnand %p1568_p0, %p1567_p12 }
 0x41a   : > { %p1013_p3 = pneg %p1012_p5 }
 0x41c   : > { %1227 = dma.done.wait (%p1013_p3), %s706_s21, 128  }
 0x41d   : > { %1229 = vsyncadd (%p1013_p3), %s706_s21, 4294967168  ;;  %p19_p7 = scmp.ge.s32.totalorder %s1360_s24, 4   ;;  %s1569_s15 = smov %s1236_s16 }
 0x41e   : > { %s1570_s16 = smov %s1240_s17  ;;  %s1571_s17 = smov %s1370_s27 }
 0x41f   : > { %s1572_s18 = smov %s1360_s24  ;;  %21 = sbr.rel (!%p19_p7) target bundleno = 7 (0x7), region = 93 }
 0x424   :  { %711 = vsyncpa [#allocation3], 1 }
 0x425   :  { %713 = vsyncpa [#allocation3 + $0x1], 1 }
 0x426   :  { %714 = vsyncpa [#allocation6], 1 }
 0x427   :  { %715 = vsyncpa [#allocation9], 1 }
 0x428   :  { %716 = vsyncpa [#allocation4], 1 }
 0x429   :  { %718 = vsyncpa [#allocation4 + $0x1], 1 }

</bundles_post_ra>
